<compile_context>
chip_gen: v6e
topology: v6e:2x2x1
jax: 0.10.0
libtpu: 0.0.40
codegen_flags: <defaults>
</compile_context>

<pallas_src>
import math
from functools import partial

import jax
import jax.numpy as jnp
from jax.experimental import pallas as pl
from jax.experimental.pallas import tpu as pltpu

NEG_SLOPE = 0.01   # torch.nn.LeakyReLU default
LANES = 128        # TPU vreg lane width
HALF = 64          # lane offset of the f half of the packed activation tile
SUBLANES = 8


def _round_up(x, m):
    return (x + m - 1) // m * m


def _cdiv(a, b):
    return -(-a // b)


# ----------------------------------------------------------------------------
# Kernel
# ----------------------------------------------------------------------------
def teacher_kernel(r_ref, f_ref, w_ref, b_ref, out_ref, x_s, *, d_in, lat2):
    """One batch block of the whole TeacherModel forward.

    r_ref  : (tb, d_in) f32  r block
    f_ref  : (tb, d_in) f32  f block
    w_ref  : (4, 128, 128) bf16 packed, zero-padded weight slabs:
             [0] fused encoder L1 (EvIn rows 0:d_in -> cols 0:hid,
                                   EvOut rows 64:64+d_in -> cols hid:2hid)
             [1] fused encoder L2 (block-diagonal: EvIn -> cols 0:lat, EvOut -> cols lat:2lat)
             [2] decoder L1 (reads z from lanes lat:2lat)
             [3] decoder L2 (writes y to lanes 2lat:2lat+d_out)
    b_ref  : (4, 128) f32 packed biases (same column layout as the weights)
    out_ref: (tb, 128) f32 single output slab:
             lanes [0:lat)=s, [lat:2lat)=z, [2lat:2lat+d_out)=y
    x_s    : (tb, 128) f32 VMEM scratch used to lane-pack r and f
    """
    tb = out_ref.shape[0]

    # Assemble the packed activation tile: r -> lanes [0:d_in), f -> lanes [64:64+d_in).
    # Padding lanes are zeroed so NaN/garbage can never leak through the zero weight rows.
    x_s[...] = jnp.zeros_like(x_s)
    x_s[:, 0:d_in] = r_ref[...]
    x_s[:, HALF:HALF + d_in] = f_ref[...]
    x = x_s[...].astype(jnp.bfloat16)

    w1 = w_ref[0]
    w2 = w_ref[1]
    w3 = w_ref[2]
    w4 = w_ref[3]
    b1 = b_ref[0:1, :]
    b2 = b_ref[1:2, :]
    b3 = b_ref[2:3, :]
    b4 = b_ref[3:4, :]

    def leaky(v):
        # LeakyReLU(v) == max(v, a*v) for 0 < a < 1 (2 VPU ops).
        return jnp.maximum(v, NEG_SLOPE * v)

    # Fused encoders: EvIn(r) and EvOut(f) in one matmul chain (bf16 MXU, f32 acc).
    h = leaky(jnp.dot(x, w1, preferred_element_type=jnp.float32) + b1)
    e = leaky(jnp.dot(h.astype(jnp.bfloat16), w2,
                      preferred_element_type=jnp.float32) + b2)
    # e lanes [0:lat)=s, [lat:2lat)=z, rest exactly 0.

    # Decoder: w3 rows lat:2lat pick z straight out of e (no sublane slicing needed).
    h2 = leaky(jnp.dot(e.astype(jnp.bfloat16), w3,
                       preferred_element_type=jnp.float32) + b3)
    o = jnp.dot(h2.astype(jnp.bfloat16), w4,
                preferred_element_type=jnp.float32) + b4
    # Exact sigmoid: exp rides the EUP slot, the divide is cheap — kernel is DMA-bound.
    y = 1.0 / (1.0 + jnp.exp(-o))

    # Single lane-dense output slab: lanes < 2*lat come from e (s,z), the rest from y.
    lane = jax.lax.broadcasted_iota(jnp.int32, (tb, LANES), 1)
    out_ref[...] = jnp.where(lane < lat2, e, y)


# ----------------------------------------------------------------------------
# Parameter construction / packing (done once, outside the kernel)
# ----------------------------------------------------------------------------
def init_linear(key, fan_in, fan_out):
    """torch.nn.Linear default init (U[-1/sqrt(fan_in), 1/sqrt(fan_in)]), (in,out) layout."""
    kw, kb = jax.random.split(key)
    bound = 1.0 / math.sqrt(fan_in)
    w = jax.random.uniform(kw, (fan_in, fan_out), jnp.float32, -bound, bound)
    b = jax.random.uniform(kb, (fan_out,), jnp.float32, -bound, bound)
    return w, b


def make_raw_params(key, input_dim, output_dim, embedding_dim, hidden=25):
    ks = jax.random.split(key, 6)
    return {
        "ev_in": (init_linear(ks[0], input_dim, hidden),
                  init_linear(ks[1], hidden, embedding_dim)),
        "ev_out": (init_linear(ks[2], input_dim, hidden),
                   init_linear(ks[3], hidden, embedding_dim)),
        "dv": (init_linear(ks[4], embedding_dim, hidden),
               init_linear(ks[5], hidden, output_dim)),
    }


def pack_params(raw):
    """Pack the 12 small tensors into one (4,128,128) bf16 weight slab + (4,128) f32 biases."""
    (w1a, b1a), (w2a, b2a) = raw["ev_in"]
    (w1b, b1b), (w2b, b2b) = raw["ev_out"]
    (w3, b3), (w4, b4) = raw["dv"]

    d_in, hid = w1a.shape
    lat = w2a.shape[1]
    dec_hid = w3.shape[1]
    d_out = w4.shape[1]

    # Lane-packing preconditions (all hold for 50/10/50/25).
    assert d_in <= HALF, "input lane-packing needs input_dim <= 64"
    assert 2 * hid <= LANES and 2 * lat <= LANES and dec_hid <= LANES
    assert 2 * lat + d_out <= LANES, "single output slab needs 2*emb + output_dim <= 128"

    w = jnp.zeros((4, LANES, LANES), jnp.float32)
    # fused encoder L1: EvIn (input lanes 0:d_in) -> cols 0:hid,
    #                   EvOut (input lanes 64:64+d_in) -> cols hid:2hid
    w = w.at[0, :d_in, :hid].set(w1a)
    w = w.at[0, HALF:HALF + d_in, hid:2 * hid].set(w1b)
    # fused encoder L2: block diagonal
    w = w.at[1, :hid, :lat].set(w2a)
    w = w.at[1, hid:2 * hid, lat:2 * lat].set(w2b)
    # decoder L1: z lives in lanes lat:2lat of the encoder output
    w = w.at[2, lat:2 * lat, :dec_hid].set(w3)
    # decoder L2: y written to lanes 2lat:2lat+d_out of the output slab
    w = w.at[3, :dec_hid, 2 * lat:2 * lat + d_out].set(w4)
    w = w.astype(jnp.bfloat16)   # MXU operands in bf16; accumulation stays f32

    b = jnp.zeros((4, LANES), jnp.float32)
    b = b.at[0, :hid].set(b1a).at[0, hid:2 * hid].set(b1b)
    b = b.at[1, :lat].set(b2a).at[1, lat:2 * lat].set(b2b)
    b = b.at[2, :dec_hid].set(b3)
    b = b.at[3, 2 * lat:2 * lat + d_out].set(b4)

    dims = {"d_in": d_in, "latent": lat, "d_out": d_out}
    return w, b, dims


# ----------------------------------------------------------------------------
# Wrapper
# ----------------------------------------------------------------------------
def teacher_forward(r, f, w_slab, b_slab, dims, *, block_rows=1024, target_blocks=4):
    d_in = dims["d_in"]
    lat = dims["latent"]
    d_out = dims["d_out"]
    lat2 = 2 * lat
    B = r.shape[0]

    # Aim for >= target_blocks batch blocks so ("parallel",) can shard across the
    # two v7x TensorCores, clamped at block_rows to amortize ~0.35us/step overhead
    # while keeping double-buffered tiles well under every generation's VMEM.
    tb = _round_up(max(1, _cdiv(B, target_blocks)), SUBLANES)
    tb = min(tb, _round_up(block_rows, SUBLANES))
    nb = _cdiv(B, tb)
    B_pad = nb * tb

    r32 = r.astype(jnp.float32)
    f32 = f.astype(jnp.float32)
    if B_pad != B:
        # Only in the ragged case: pad rows so every grid block is fully in-bounds.
        r32 = jnp.pad(r32, ((0, B_pad - B), (0, 0)))
        f32 = jnp.pad(f32, ((0, B_pad - B), (0, 0)))

    out = pl.pallas_call(
        partial(teacher_kernel, d_in=d_in, lat2=lat2),
        out_shape=jax.ShapeDtypeStruct((B_pad, LANES), jnp.float32),
        grid=(nb,),
        in_specs=[
            pl.BlockSpec((tb, d_in), lambda i: (i, 0)),           # r (full last dim)
            pl.BlockSpec((tb, d_in), lambda i: (i, 0)),           # f (full last dim)
            pl.BlockSpec((4, LANES, LANES), lambda i: (0, 0, 0)),  # packed weights (resident)
            pl.BlockSpec((4, LANES), lambda i: (0, 0)),            # packed biases (resident)
        ],
        out_specs=pl.BlockSpec((tb, LANES), lambda i: (i, 0)),     # single lane-dense slab
        scratch_shapes=[pltpu.VMEM((tb, LANES), jnp.float32)],     # in-kernel lane packing
        compiler_params=pltpu.CompilerParams(
            dimension_semantics=("parallel",),
            vmem_limit_bytes=32 * 1024 * 1024),                    # explicit for v5e's 16MiB default
    )(r32, f32, w_slab, b_slab)

    s = out[:B, :lat]
    z = out[:B, lat:lat2]
    y = out[:B, lat2:lat2 + d_out]
    return s, z, y


# ----------------------------------------------------------------------------
# Pure-JAX reference (f32)
# ----------------------------------------------------------------------------
def _leaky_ref(x):
    return jnp.where(x > 0, x, NEG_SLOPE * x)


def reference_forward(r, f, raw):
    def enc(x, layers):
        (w1, b1), (w2, b2) = layers
        h = _leaky_ref(x @ w1 + b1)
        return _leaky_ref(h @ w2 + b2)

    s = enc(r, raw["ev_in"])
    z = enc(f, raw["ev_out"])
    (w3, b3), (w4, b4) = raw["dv"]
    h = _leaky_ref(z @ w3 + b3)
    y = jax.nn.sigmoid(h @ w4 + b4)
    return s, z, y


if __name__ == "__main__":
    batch = 8
    input_dim = 50
    output_dim = 50
    embedding_dim = 10   # module-level globals in the reference file

    key = jax.random.PRNGKey(0)
    k_r, k_f, k_p = jax.random.split(key, 3)
    r = jax.random.normal(k_r, (batch, input_dim), jnp.float32)
    f = jax.random.normal(k_f, (batch, input_dim), jnp.float32)

    raw = make_raw_params(k_p, input_dim, output_dim, embedding_dim)
    w_slab, b_slab, dims = pack_params(raw)

    s, z, y = teacher_forward(r, f, w_slab, b_slab, dims)
    jax.block_until_ready((s, z, y))

    s_ref, z_ref, y_ref = reference_forward(r, f, raw)
    assert s.shape == (batch, embedding_dim)
    assert z.shape == (batch, embedding_dim)
    assert y.shape == (batch, output_dim)
    # Tolerance covers bf16 MXU operand rounding (f32 accumulation / bias / activations).
    assert jnp.allclose(s, s_ref, atol=3e-2, rtol=3e-2), "s mismatch"
    assert jnp.allclose(z, z_ref, atol=3e-2, rtol=3e-2), "z mismatch"
    assert jnp.allclose(y, y_ref, atol=3e-2, rtol=3e-2), "y mismatch"

    print("KERNEL_OK")
</pallas_src>

<mosaic_0001>
module attributes {stable_mosaic.version = 11 : i64} {
  func.func @teacher_kernel(%arg0: i32, %arg1: memref<8x50xf32, #tpu.memory_space<vmem>>, %arg2: memref<8x50xf32, #tpu.memory_space<vmem>>, %arg3: memref<4x128x128xbf16, #tpu.memory_space<vmem>>, %arg4: memref<4x128xf32, #tpu.memory_space<vmem>>, %arg5: memref<8x128xf32, #tpu.memory_space<vmem>>, %arg6: memref<8x128xf32, #tpu.memory_space<vmem>>) attributes {dimension_semantics = [#tpu.dimension_semantics<parallel>], iteration_bounds = array<i64: 1>, scalar_prefetch = 0 : i64, scratch_operands = 1 : i64, tpu.core_type = #tpu.core_type<tc>, window_params = [{transform_indices = @transform_0, window_bounds = array<i64: 8, 50>}, {transform_indices = @transform_1, window_bounds = array<i64: 8, 50>}, {pipeline_mode = #tpu.pipeline_mode<synchronous>, transform_indices = @transform_2, window_bounds = array<i64: 4, 128, 128>}, {pipeline_mode = #tpu.pipeline_mode<synchronous>, transform_indices = @transform_3, window_bounds = array<i64: 4, 128>}, {transform_indices = @transform_4, window_bounds = array<i64: 8, 128>}]} {
    %cst = arith.constant 0.000000e+00 : f32
    %0 = vector.broadcast %cst : f32 to vector<8x128xf32>
    %c0 = arith.constant 0 : index
    %c0_0 = arith.constant 0 : index
    %1 = vector.load %arg6[%c0, %c0_0] : memref<8x128xf32, #tpu.memory_space<vmem>>, vector<8x128xf32>
    tpu.vector_store %arg6[%c0, %c0_0], %0 {strides = array<i32>} : memref<8x128xf32, #tpu.memory_space<vmem>>, vector<8x128xf32>,
    %c0_1 = arith.constant 0 : index
    %c0_2 = arith.constant 0 : index
    %2 = vector.load %arg1[%c0_1, %c0_2] : memref<8x50xf32, #tpu.memory_space<vmem>>, vector<8x50xf32>
    %c0_3 = arith.constant 0 : index
    %c0_4 = arith.constant 0 : index
    %3 = vector.load %arg6[%c0_3, %c0_4] : memref<8x128xf32, #tpu.memory_space<vmem>>, vector<8x50xf32>
    tpu.vector_store %arg6[%c0_3, %c0_4], %2 {strides = array<i32>} : memref<8x128xf32, #tpu.memory_space<vmem>>, vector<8x50xf32>,
    %c0_5 = arith.constant 0 : index
    %c0_6 = arith.constant 0 : index
    %4 = vector.load %arg2[%c0_5, %c0_6] : memref<8x50xf32, #tpu.memory_space<vmem>>, vector<8x50xf32>
    %c0_7 = arith.constant 0 : index
    %c64 = arith.constant 64 : index
    %5 = vector.load %arg6[%c0_7, %c64] : memref<8x128xf32, #tpu.memory_space<vmem>>, vector<8x50xf32>
    tpu.vector_store %arg6[%c0_7, %c64], %4 {strides = array<i32>} : memref<8x128xf32, #tpu.memory_space<vmem>>, vector<8x50xf32>,
    %c0_8 = arith.constant 0 : index
    %c0_9 = arith.constant 0 : index
    %6 = vector.load %arg6[%c0_8, %c0_9] : memref<8x128xf32, #tpu.memory_space<vmem>>, vector<8x128xf32>
    %7 = arith.truncf %6 : vector<8x128xf32> to vector<8x128xbf16>
    %c0_10 = arith.constant 0 : index
    %c0_11 = arith.constant 0 : index
    %c0_12 = arith.constant 0 : index
    %8 = vector.load %arg3[%c0_10, %c0_11, %c0_12] : memref<4x128x128xbf16, #tpu.memory_space<vmem>>, vector<1x128x128xbf16>
    %9 = vector.shape_cast %8 : vector<1x128x128xbf16> to vector<128x128xbf16>
    %c1 = arith.constant 1 : index
    %c0_13 = arith.constant 0 : index
    %c0_14 = arith.constant 0 : index
    %10 = vector.load %arg3[%c1, %c0_13, %c0_14] : memref<4x128x128xbf16, #tpu.memory_space<vmem>>, vector<1x128x128xbf16>
    %11 = vector.shape_cast %10 : vector<1x128x128xbf16> to vector<128x128xbf16>
    %c2 = arith.constant 2 : index
    %c0_15 = arith.constant 0 : index
    %c0_16 = arith.constant 0 : index
    %12 = vector.load %arg3[%c2, %c0_15, %c0_16] : memref<4x128x128xbf16, #tpu.memory_space<vmem>>, vector<1x128x128xbf16>
    %13 = vector.shape_cast %12 : vector<1x128x128xbf16> to vector<128x128xbf16>
    %c3 = arith.constant 3 : index
    %c0_17 = arith.constant 0 : index
    %c0_18 = arith.constant 0 : index
    %14 = vector.load %arg3[%c3, %c0_17, %c0_18] : memref<4x128x128xbf16, #tpu.memory_space<vmem>>, vector<1x128x128xbf16>
    %15 = vector.shape_cast %14 : vector<1x128x128xbf16> to vector<128x128xbf16>
    %c0_19 = arith.constant 0 : index
    %c0_20 = arith.constant 0 : index
    %16 = vector.load %arg4[%c0_19, %c0_20] : memref<4x128xf32, #tpu.memory_space<vmem>>, vector<1x128xf32>
    %c1_21 = arith.constant 1 : index
    %c0_22 = arith.constant 0 : index
    %17 = vector.load %arg4[%c1_21, %c0_22] : memref<4x128xf32, #tpu.memory_space<vmem>>, vector<1x128xf32>
    %c2_23 = arith.constant 2 : index
    %c0_24 = arith.constant 0 : index
    %18 = vector.load %arg4[%c2_23, %c0_24] : memref<4x128xf32, #tpu.memory_space<vmem>>, vector<1x128xf32>
    %c3_25 = arith.constant 3 : index
    %c0_26 = arith.constant 0 : index
    %19 = vector.load %arg4[%c3_25, %c0_26] : memref<4x128xf32, #tpu.memory_space<vmem>>, vector<1x128xf32>
    %cst_27 = arith.constant dense<0.000000e+00> : vector<8x128xf32>
    %20 = tpu.matmul %7, %9, %cst_27 {dimension_numbers = #tpu.dot_dimension_numbers<[1], [0], [0], [1], [0, 0, 1, 1], [], []>} : vector<8x128xbf16>, vector<128x128xbf16>, vector<8x128xf32> -> vector<8x128xf32>
    %21 = vector.broadcast %16 : vector<1x128xf32> to vector<8x128xf32>
    %22 = arith.addf %20, %21 : vector<8x128xf32>
    %cst_28 = arith.constant 0.00999999977 : f32
    %23 = vector.broadcast %cst_28 : f32 to vector<8x128xf32>
    %24 = arith.mulf %23, %22 : vector<8x128xf32>
    %25 = arith.maximumf %22, %24 : vector<8x128xf32>
    %26 = arith.truncf %25 : vector<8x128xf32> to vector<8x128xbf16>
    %cst_29 = arith.constant dense<0.000000e+00> : vector<8x128xf32>
    %27 = tpu.matmul %26, %11, %cst_29 {dimension_numbers = #tpu.dot_dimension_numbers<[1], [0], [0], [1], [0, 0, 1, 1], [], []>} : vector<8x128xbf16>, vector<128x128xbf16>, vector<8x128xf32> -> vector<8x128xf32>
    %28 = vector.broadcast %17 : vector<1x128xf32> to vector<8x128xf32>
    %29 = arith.addf %27, %28 : vector<8x128xf32>
    %cst_30 = arith.constant 0.00999999977 : f32
    %30 = vector.broadcast %cst_30 : f32 to vector<8x128xf32>
    %31 = arith.mulf %30, %29 : vector<8x128xf32>
    %32 = arith.maximumf %29, %31 : vector<8x128xf32>
    %33 = arith.truncf %32 : vector<8x128xf32> to vector<8x128xbf16>
    %cst_31 = arith.constant dense<0.000000e+00> : vector<8x128xf32>
    %34 = tpu.matmul %33, %13, %cst_31 {dimension_numbers = #tpu.dot_dimension_numbers<[1], [0], [0], [1], [0, 0, 1, 1], [], []>} : vector<8x128xbf16>, vector<128x128xbf16>, vector<8x128xf32> -> vector<8x128xf32>
    %35 = vector.broadcast %18 : vector<1x128xf32> to vector<8x128xf32>
    %36 = arith.addf %34, %35 : vector<8x128xf32>
    %cst_32 = arith.constant 0.00999999977 : f32
    %37 = vector.broadcast %cst_32 : f32 to vector<8x128xf32>
    %38 = arith.mulf %37, %36 : vector<8x128xf32>
    %39 = arith.maximumf %36, %38 : vector<8x128xf32>
    %40 = arith.truncf %39 : vector<8x128xf32> to vector<8x128xbf16>
    %cst_33 = arith.constant dense<0.000000e+00> : vector<8x128xf32>
    %41 = tpu.matmul %40, %15, %cst_33 {dimension_numbers = #tpu.dot_dimension_numbers<[1], [0], [0], [1], [0, 0, 1, 1], [], []>} : vector<8x128xbf16>, vector<128x128xbf16>, vector<8x128xf32> -> vector<8x128xf32>
    %42 = vector.broadcast %19 : vector<1x128xf32> to vector<8x128xf32>
    %43 = arith.addf %41, %42 : vector<8x128xf32>
    %cst_34 = arith.constant 0.000000e+00 : f32
    %44 = vector.broadcast %cst_34 : f32 to vector<8x128xf32>
    %45 = arith.subf %44, %43 : vector<8x128xf32>
    %46 = math.exp %45 : vector<8x128xf32>
    %cst_35 = arith.constant 1.000000e+00 : f32
    %47 = vector.broadcast %cst_35 : f32 to vector<8x128xf32>
    %48 = arith.addf %47, %46 : vector<8x128xf32>
    %cst_36 = arith.constant 1.000000e+00 : f32
    %49 = vector.broadcast %cst_36 : f32 to vector<8x128xf32>
    %50 = arith.divf %49, %48 : vector<8x128xf32>
    %51 = tpu.iota {dimensions = array<i32: 1>} : vector<8x128xi32>
    %c20_i32 = arith.constant 20 : i32
    %52 = vector.broadcast %c20_i32 : i32 to vector<8x128xi32>
    %53 = arith.cmpi slt, %51, %52 : vector<8x128xi32>
    %54 = arith.select %53, %32, %50 : vector<8x128xi1>, vector<8x128xf32>
    %c0_37 = arith.constant 0 : index
    %c0_38 = arith.constant 0 : index
    %55 = vector.load %arg5[%c0_37, %c0_38] : memref<8x128xf32, #tpu.memory_space<vmem>>, vector<8x128xf32>
    tpu.vector_store %arg5[%c0_37, %c0_38], %54 {strides = array<i32>} : memref<8x128xf32, #tpu.memory_space<vmem>>, vector<8x128xf32>,
    return
  }
  func.func @transform_0(%arg0: i32) -> (i32, i32) {
    %c0_i32 = arith.constant 0 : i32
    %c0_i32_0 = arith.constant 0 : i32
    return %arg0, %c0_i32 : i32, i32
  }
  func.func @transform_1(%arg0: i32) -> (i32, i32) {
    %c0_i32 = arith.constant 0 : i32
    %c0_i32_0 = arith.constant 0 : i32
    return %arg0, %c0_i32 : i32, i32
  }
  func.func @transform_2(%arg0: i32) -> (i32, i32, i32) {
    %c0_i32 = arith.constant 0 : i32
    %c0_i32_0 = arith.constant 0 : i32
    %c0_i32_1 = arith.constant 0 : i32
    %c0_i32_2 = arith.constant 0 : i32
    return %c0_i32, %c0_i32_0, %c0_i32_1 : i32, i32, i32
  }
  func.func @transform_3(%arg0: i32) -> (i32, i32) {
    %c0_i32 = arith.constant 0 : i32
    %c0_i32_0 = arith.constant 0 : i32
    %c0_i32_1 = arith.constant 0 : i32
    return %c0_i32, %c0_i32_0 : i32, i32
  }
  func.func @transform_4(%arg0: i32) -> (i32, i32) {
    %c0_i32 = arith.constant 0 : i32
    %c0_i32_0 = arith.constant 0 : i32
    return %arg0, %c0_i32 : i32, i32
  }
}

</mosaic_0001>

<bundles_post_ra>
// kernel: tpu_custom_call.1
= control target key start
LH: loop header
LB: loop body
LE: loop exit
PB: predicated region body
PF: predicated region fallthrough
CT: control target
= control target key end

     0   :  { %9 = vsyncpa [#allocation4], 0  ;;  %s924_s0 = inlined_call_operand.hbm [shape: f32[8,50], index: 0, kind: input, shape index: {}]   ;;  %s925_s1 = inlined_call_operand.hbm [shape: f32[8,50], index: 1, kind: input, shape index: {}]   ;;  %s926_s2 = inlined_call_operand.hbm [shape: bf16[4,128,128], index: 2, kind: input, shape index: {}]   ;;  %s927_s3 = inlined_call_operand.vmem [shape: f32[4,128], index: 3, kind: input, shape index: {}]   ;;  %s928_s4 = inlined_call_operand.hbm [shape: f32[8,128], index: 4, kind: output, shape index: {}]  }
   0x1   :  { %10 = vsyncpa [#allocation7], 0 }
   0x2   :  { %11 = vsyncpa [#allocation5], 0  ;;  %s826_s15 = smov [#allocation6]   ;;  %s827_s17 = smov [#allocation3]  }
   0x3   :  { %s28_s16 = sshll.u32 %s826_s15, 4  ;;  %s18_s18 = sshll.u32 %s827_s17, 4  ;;  %s29_s16 = int_to_ptr.vmem [resolvable:$true] %s28_s16  ;;  %s19_s18 = int_to_ptr.vmem [resolvable:$true] %s18_s18 }
   0x4   :  { %s748_s19 = scalar_lea.vmem %s29_s16, 128  ;;  %p753_p1 = scmp.lt.s32.totalorder %s29_s16, %s29_s16 }
   0x5   :  { %p749_p0 = scmp.ne.s32.totalorder %s29_s16, %s748_s19  ;;  %p754_p2 = scmp.lt.s32.totalorder %s748_s19, %s748_s19 }
   0x7   :  { %p755_p3 = por %p754_p2, %p753_p1 }
   0x9   :  { %p756_p4 = pnand %p755_p3, %p749_p0 }
   0xb   :  { %759 = shalt.err (!%p756_p4)
}
   0xc   :  { %31 = dma.hbm_to_vmem [thread:$0]  %s925_s1, 128, %s29_s16, [#allocation7]  }
   0xd   :  { %s768_s22 = scalar_lea.vmem %s19_s18, 128  ;;  %p773_p6 = scmp.lt.s32.totalorder %s19_s18, %s19_s18 }
   0xe   :  { %p769_p5 = scmp.ne.s32.totalorder %s19_s18, %s768_s22  ;;  %p774_p7 = scmp.lt.s32.totalorder %s768_s22, %s768_s22 }
  0x10   :  { %p775_p8 = por %p774_p7, %p773_p6 }
  0x12   :  { %p776_p9 = pnand %p775_p8, %p769_p5 }
  0x14   :  { %779 = shalt.err (!%p776_p9)
}
  0x15   :  { %21 = dma.hbm_to_vmem [thread:$0]  %s924_s0, 128, %s19_s18, [#allocation4]  }
  0x16   :  { %s828_s25 = smov [#allocation8]  }
  0x17   :  { %s37_s26 = sshll.u32 %s828_s25, 4  ;;  %s38_s26 = int_to_ptr.vmem [resolvable:$true] %s37_s26 }
  0x18   :  { %s788_s27 = scalar_lea.vmem %s38_s26, 4096  ;;  %p793_p11 = scmp.lt.s32.totalorder %s38_s26, %s38_s26 }
  0x19   :  { %p789_p10 = scmp.ne.s32.totalorder %s38_s26, %s788_s27  ;;  %p794_p12 = scmp.lt.s32.totalorder %s788_s27, %s788_s27 }
  0x1b   :  { %p795_p13 = por %p794_p12, %p793_p11 }
  0x1d   :  { %p796_p0 = pnand %p795_p13, %p789_p10 }
  0x1f   :  { %799 = shalt.err (!%p796_p0)
}
  0x20   :  { %s829_s1 = smov 64   ;;  %s830_s28 = smov 4  }
  0x21   :  { %43 = dma.hbm_to_vmem [thread:$0]  %s926_s2, 4096, %s38_s26, [#allocation7], %s829_s1, %s829_s1, %s830_s28  }
  0x22   :  { %820 = dma.done.wait [#allocation4], 128  }
  0x23   :  { %821 = vsyncadd [#allocation4], 4294967168 }
  0x24   :  { %822 = dma.done.wait [#allocation7], 4224  }
  0x25   :  { %823 = vsyncadd [#allocation7], 4294963072  ;;  %v831_v0 = vmov 0.0   ;;  %vm832_vm0 = vmmov 0   ;;  %v60_v1 = vld [vmem:[#allocation6] sm:$0xff]  ;;  %v705_v3 = vld [vmem:[#allocation8 + $0x30] sm:$0xff]  }
  0x26   :  { %616 = vmatprep.subr.bf16.mxu0 %v831_v0  ;;  %56 = vst [vmem:[#allocation2] sm:$0xff] %v831_v0  ;;  %632 = vmatprep.mubr.msk.bf16.mxu0 %vm832_vm0, %v831_v0  ;;  %v704_v2 = vld [vmem:[#allocation8 + $0x38] sm:$0xff]   ;;  %vm58_vm1 = vcmask 408576   ;;  %v57_v4 = vld [vmem:[#allocation3] sm:$0xff]  ;;  %v706_v5 = vld [vmem:[#allocation8 + $0x28] sm:$0xff]   ;;  %vm65_vm2 = vcmask 933376  }
  0x27   :  { %636 = vmatprep.subr.bf16.mxu1 %v831_v0  ;;  %652 = vmatprep.mubr.msk.bf16.mxu1 %vm832_vm0, %v831_v0  ;;  %59 = vst.msk [vmem:[#allocation2] sm:$0xff] %vm58_vm1, %v57_v4  ;;  %v712_v6 = vld [vmem:[#allocation8 + $0x78] sm:$0xff]   ;;  %v707_v7 = vld [vmem:[#allocation8 + $0x20] sm:$0xff]   ;;  %v713_v8 = vld [vmem:[#allocation8 + $0x70] sm:$0xff]   ;;  %s833_s11 = smov [#allocation9]  }
  0x28   :  { %62 = vrot.lane.b32.xlu0 %v60_v1, %s829_s1  ;;  %617 = vmatpush3.bf16.msra.mxu0 %v704_v2  ;;  %v708_v9 = vld [vmem:[#allocation8 + $0x18] sm:$0xff]   ;;  %v714_v10 = vld [vmem:[#allocation8 + $0x68] sm:$0xff]   ;;  %v709_v11 = vld [vmem:[#allocation8 + $0x10] sm:$0xff]   ;;  %s534_s12 = sshll.u32 %s833_s11, 4  ;;  %s535_s12 = int_to_ptr.vmem [resolvable:$true] %s534_s12 }
  0x29   :  { %618 = vmatprep.subr.bf16.mxu0 %v831_v0  ;;  %637 = vmatpush3.bf16.msra.mxu1 %v712_v6  ;;  %v715_v12 = vld [vmem:[#allocation8 + $0x60] sm:$0xff]   ;;  %v710_v13 = vld [vmem:[#allocation8 + $0x8] sm:$0xff]   ;;  %v716_v14 = vld [vmem:[#allocation8 + $0x58] sm:$0xff]   ;;  %p805_p2 = scmp.lt.s32.totalorder %s535_s12, %s535_s12 }
  0x2a   :  { %638 = vmatprep.subr.bf16.mxu1 %v831_v0  ;;  %v711_v15 = vld [vmem:[#allocation8] sm:$0xff]   ;;  %v717_v16 = vld [vmem:[#allocation8 + $0x50] sm:$0xff]   ;;  %v718_v20 = vld [vmem:[#allocation8 + $0x48] sm:$0xff]  }
  0x2b   :  { %v719_v21 = vld [vmem:[#allocation8 + $0x40] sm:$0xff]   ;;  %v720_v22 = vld [vmem:[#allocation8 + $0xb8] sm:$0xff]   ;;  %v721_v23 = vld [vmem:[#allocation8 + $0xb0] sm:$0xff]  }
  0x2c   :  { %619 = vmatpush3.bf16.msra.mxu0 %v705_v3  ;;  %v722_v24 = vld [vmem:[#allocation8 + $0xa8] sm:$0xff]   ;;  %v723_v25 = vld [vmem:[#allocation8 + $0xa0] sm:$0xff]   ;;  %v724_v26 = vld [vmem:[#allocation8 + $0x98] sm:$0xff]  }
  0x2d   :  { %620 = vmatprep.subr.bf16.mxu0 %v831_v0  ;;  %639 = vmatpush3.bf16.msra.mxu1 %v713_v8  ;;  %v725_v27 = vld [vmem:[#allocation8 + $0x90] sm:$0xff]   ;;  %v544_v28 = vld [vmem:[%s927_s3] ss:$0 sm:$0xff]  ;;  %v727_v38 = vld [vmem:[#allocation8 + $0x80] sm:$0xff]  }
  0x2e   :  { %640 = vmatprep.subr.bf16.mxu1 %v831_v0  ;;  %v726_v37 = vld [vmem:[#allocation8 + $0x88] sm:$0xff]   ;;  %v728_v39 = vld [vmem:[#allocation8 + $0xf8] sm:$0xff]   ;;  %v729_v40 = vld [vmem:[#allocation8 + $0xf0] sm:$0xff]  }
  0x2f   :  { %v730_v41 = vld [vmem:[#allocation8 + $0xe8] sm:$0xff]   ;;  %v731_v42 = vld [vmem:[#allocation8 + $0xe0] sm:$0xff]   ;;  %v732_v43 = vld [vmem:[#allocation8 + $0xd8] sm:$0xff]  }
  0x30   :  { %621 = vmatpush3.bf16.msra.mxu0 %v706_v5  ;;  %v733_v44 = vld [vmem:[#allocation8 + $0xd0] sm:$0xff]   ;;  %v553_v45 = vld [vmem:[%s927_s3 + $0x1] ss:$0 sm:$0xff]  ;;  %v735_v55 = vld [vmem:[#allocation8 + $0xc0] sm:$0xff]  }
  0x31   :  { %622 = vmatprep.subr.bf16.mxu0 %v831_v0  ;;  %641 = vmatpush3.bf16.msra.mxu1 %v714_v10  ;;  %v734_v54 = vld [vmem:[#allocation8 + $0xc8] sm:$0xff]  }
  0x32   :  { %642 = vmatprep.subr.bf16.mxu1 %v831_v0  ;;  %v562_v56 = vld [vmem:[%s927_s3 + $0x2] ss:$0 sm:$0xff]  ;;  %v571_v2 = vld [vmem:[%s927_s3 + $0x3] ss:$0 sm:$0xff]  ;;  %s800_s3 = scalar_lea.vmem %s535_s12, 128 }
  0x33   :  { %p801_p1 = scmp.ne.s32.totalorder %s535_s12, %s800_s3  ;;  %p806_p3 = scmp.lt.s32.totalorder %s800_s3, %s800_s3 }
  0x34   :  { %623 = vmatpush3.bf16.msra.mxu0 %v707_v7 }
  0x35   :  { %624 = vmatprep.subr.bf16.mxu0 %v831_v0  ;;  %643 = vmatpush3.bf16.msra.mxu1 %v715_v12  ;;  %p807_p4 = por %p806_p3, %p805_p2 }
  0x36   :  { %644 = vmatprep.subr.bf16.mxu1 %v831_v0 }
  0x37   :  { %p808_p5 = pnand %p807_p4, %p801_p1 }
  0x38   :  { %625 = vmatpush3.bf16.msra.mxu0 %v708_v9 }
  0x39   :  { %626 = vmatprep.subr.bf16.mxu0 %v831_v0  ;;  %645 = vmatpush3.bf16.msra.mxu1 %v716_v14 }
  0x3a   :  { %646 = vmatprep.subr.bf16.mxu1 %v831_v0 }
  0x3c   :  { %627 = vmatpush3.bf16.msra.mxu0 %v709_v11  ;;  %v523_v11 = vlaneseq }
  0x3d   :  { %628 = vmatprep.subr.bf16.mxu0 %v831_v0  ;;  %647 = vmatpush3.bf16.msra.mxu1 %v717_v16 }
  0x3e   :  { %648 = vmatprep.subr.bf16.mxu1 %v831_v0  ;;  %v524_v12 = vand.u32 127, %v523_v11 }
  0x40   :  { %629 = vmatpush3.bf16.msra.mxu0 %v710_v13  ;;  %vm525_vm3 = vcmp.lt.s32.totalorder %v524_v12, 20 }
  0x41   :  { %630 = vmatprep.subr.bf16.mxu0 %v831_v0  ;;  %649 = vmatpush3.bf16.msra.mxu1 %v718_v20 }
  0x42   :  { %650 = vmatprep.subr.bf16.mxu1 %v831_v0 }
  0x44   :  { %631 = vmatpush3.bf16.msra.mxu0 %v711_v15 }
  0x45   :  { %656 = vmatprep.subr.bf16.mxu0 %v831_v0  ;;  %651 = vmatpush3.bf16.msra.mxu1 %v719_v21 }
  0x46   :  { %676 = vmatprep.subr.bf16.mxu1 %v831_v0 }
  0x9a   :  { %v63_v17 = vpop.permute.xlu0 %62 }
  0x9b   :  { %66 = vst.msk [vmem:[#allocation2] sm:$0xff] %vm65_vm2, %v63_v17 }
  0xa2   :  { %v67_v18 = vld [vmem:[#allocation2] sm:$0xff] }
  0xa3   :  { %v68_v19 = vpack.c.bf16 %v67_v18, %v67_v18 }
  0xa5   :  { %633 = vmatmul.mubr.bf16.vlgmr.msra.gmra.mxu0 %v68_v19 }
  0xa6   :  { %672 = vmatprep.mubr.msk.bf16.mxu0 %vm832_vm0, %v831_v0  ;;  %657 = vmatpush3.bf16.msra.mxu0 %v720_v22 }
  0xa7   :  { %658 = vmatprep.subr.bf16.mxu0 %v831_v0 }
  0xaa   :  { %659 = vmatpush3.bf16.msra.mxu0 %v721_v23 }
  0xab   :  { %660 = vmatprep.subr.bf16.mxu0 %v831_v0 }
  0xae   :  { %661 = vmatpush3.bf16.msra.mxu0 %v722_v24 }
  0xaf   :  { %662 = vmatprep.subr.bf16.mxu0 %v831_v0 }
  0xb2   :  { %663 = vmatpush3.bf16.msra.mxu0 %v723_v25 }
  0xb3   :  { %664 = vmatprep.subr.bf16.mxu0 %v831_v0 }
  0xb6   :  { %665 = vmatpush3.bf16.msra.mxu0 %v724_v26 }
  0xb7   :  { %666 = vmatprep.subr.bf16.mxu0 %v831_v0 }
  0xba   :  { %667 = vmatpush3.bf16.msra.mxu0 %v725_v27 }
  0xbb   :  { %668 = vmatprep.subr.bf16.mxu0 %v831_v0 }
  0xbe   :  { %669 = vmatpush3.bf16.msra.mxu0 %v726_v37 }
  0xbf   :  { %670 = vmatprep.subr.bf16.mxu0 %v831_v0 }
  0xc2   :  { %671 = vmatpush3.bf16.msra.mxu0 %v727_v38 }
 0x165   :  { %v226_v29 = vpop.f32.mrf.mxu0 }
 0x166   :  { %v227_v30 = vadd.f32 %v544_v28, %v226_v29 }
 0x167   :  { %v634_v31 = vpop.f32.mrf.mxu0 }
 0x168   :  { %v232_v32 = vmul.f32 0.01, %v227_v30 }
 0x169   :  { %v229_v33 = vpop.f32.mrf.mxu0 }
 0x16a   :  { %v233_v34 = vmax.f32 %v227_v30, %v232_v32 }
 0x16b   :  { %v635_v35 = vpop.f32.mrf.mxu0 }
 0x16c   :  { %v234_v36 = vpack.c.bf16 %v233_v34, %v233_v34 }
 0x16e   :  { %653 = vmatmul.mubr.bf16.vlgmr.msra.gmra.mxu1 %v234_v36 }
 0x16f   :  { %692 = vmatprep.mubr.msk.bf16.mxu1 %vm832_vm0, %v831_v0  ;;  %677 = vmatpush3.bf16.msra.mxu1 %v728_v39 }
 0x170   :  { %678 = vmatprep.subr.bf16.mxu1 %v831_v0 }
 0x173   :  { %679 = vmatpush3.bf16.msra.mxu1 %v729_v40 }
 0x174   :  { %680 = vmatprep.subr.bf16.mxu1 %v831_v0 }
 0x177   :  { %681 = vmatpush3.bf16.msra.mxu1 %v730_v41 }
 0x178   :  { %682 = vmatprep.subr.bf16.mxu1 %v831_v0 }
 0x17b   :  { %683 = vmatpush3.bf16.msra.mxu1 %v731_v42 }
 0x17c   :  { %684 = vmatprep.subr.bf16.mxu1 %v831_v0 }
 0x17f   :  { %685 = vmatpush3.bf16.msra.mxu1 %v732_v43 }
 0x180   :  { %686 = vmatprep.subr.bf16.mxu1 %v831_v0 }
 0x183   :  { %687 = vmatpush3.bf16.msra.mxu1 %v733_v44 }
 0x184   :  { %688 = vmatprep.subr.bf16.mxu1 %v831_v0 }
 0x187   :  { %689 = vmatpush3.bf16.msra.mxu1 %v734_v54 }
 0x188   :  { %690 = vmatprep.subr.bf16.mxu1 %v831_v0 }
 0x18b   :  { %691 = vmatpush3.bf16.msra.mxu1 %v735_v55 }
 0x22e   :  { %v321_v46 = vpop.f32.mrf.mxu1 }
 0x22f   :  { %v322_v47 = vadd.f32 %v553_v45, %v321_v46 }
 0x230   :  { %v654_v48 = vpop.f32.mrf.mxu1 }
 0x231   :  { %v327_v49 = vmul.f32 0.01, %v322_v47 }
 0x232   :  { %v324_v50 = vpop.f32.mrf.mxu1 }
 0x233   :  { %v328_v51 = vmax.f32 %v322_v47, %v327_v49 }
 0x234   :  { %v655_v52 = vpop.f32.mrf.mxu1 }
 0x235   :  { %v329_v53 = vpack.c.bf16 %v328_v51, %v328_v51 }
 0x237   :  { %673 = vmatmul.mubr.bf16.vlgmr.msra.gmra.mxu0 %v329_v53 }
 0x2f7   :  { %v416_v57 = vpop.f32.mrf.mxu0 }
 0x2f8   :  { %v417_v58 = vadd.f32 %v562_v56, %v416_v57 }
 0x2f9   :  { %v674_v59 = vpop.f32.mrf.mxu0 }
 0x2fa   :  { %v422_v60 = vmul.f32 0.01, %v417_v58 }
 0x2fb   :  { %v419_v61 = vpop.f32.mrf.mxu0 }
 0x2fc   :  { %v423_v62 = vmax.f32 %v417_v58, %v422_v60 }
 0x2fd   :  { %v675_v63 = vpop.f32.mrf.mxu0 }
 0x2fe   :  { %v424_v1 = vpack.c.bf16 %v423_v62, %v423_v62 }
 0x300   :  { %693 = vmatmul.mubr.bf16.vlgmr.msra.gmra.mxu1 %v424_v1 }
 0x3c0   :  { %v511_v0 = vpop.f32.mrf.mxu1 }
 0x3c1   :  { %v512_v3 = vadd.f32 %v571_v2, %v511_v0 }
 0x3c2   :  { %v694_v4 = vpop.f32.mrf.mxu1 }
 0x3c3   :  { %v517_v5 = vsub.f32 0.0, %v512_v3 }
 0x3c4   :  { %v514_v6 = vpop.f32.mrf.mxu1 }
 0x3c5   :  { %v518_v7 = vmul.f32 1.442695, %v517_v5 }
 0x3c6   :  { %v695_v8 = vpop.f32.mrf.mxu1 }
 0x3c7   :  { %736 = vpow2.f32 %v518_v7 }
 0x3d4   :  { %v737_v9 = vpop.eup %736 }
 0x3d5   :  { %v520_v10 = vadd.f32 1.0, %v737_v9 }
 0x3d7   :  { %738 = vrcp.f32 %v520_v10 }
 0x3e4   :  { %v739_v13 = vpop.eup %738 }
 0x3e5   :  { %v526_v14 = vsel %vm525_vm3, %v328_v51, %v739_v13 }
 0x3e6   :  { %527 = vst [vmem:[#allocation9] sm:$0xff] %v526_v14 }
 0x3e7   :  { %811 = shalt.err (!%p808_p5)
}
 0x3e8   :  { %537 = dma.vmem_to_hbm [thread:$0]  %s535_s12, 128, %s928_s4, [#allocation5]  }
 0x3e9   :  { %824 = dma.done.wait [#allocation5], 128  }
 0x3ea   :  { %825 = vsyncadd [#allocation5], 4294967168 }
 0x3eb   :  { %541 = vsyncpa [#allocation4], 1 }
 0x3ec   :  { %542 = vsyncpa [#allocation7], 1 }
 0x3ed   :  { %543 = vsyncpa [#allocation5], 1 }

</bundles_post_ra>
